<compile_context>
chip_gen: v7x
topology: tpu7x:2x2x1
jax: 0.10.0
libtpu: 0.0.40
codegen_flags: <defaults>
</compile_context>

<pallas_src>
import functools

import jax
import jax.numpy as jnp
from jax.experimental import pallas as pl
from jax.experimental.pallas import tpu as pltpu


LANES = 128                # lane width of the batch slab
DEFAULT_TILE_ROWS = 8192   # 8192 rows x 128 lanes = 1 Mi batch elems / step


def _linear_kernel(params_ref, x_ref, o_ref):
    # params_ref: SMEM f32[3]         -> [w0, w1, bias]
    # x_ref:      VMEM (2, tr, 128)   batch slab, feature on the leading axis
    # o_ref:      VMEM (tr, 128)      lane/sublane-dense output slab
    w0 = params_ref[0]
    w1 = params_ref[1]
    bias = params_ref[2]

    x0 = x_ref[0].astype(jnp.float32)   # (tr, 128)
    x1 = x_ref[1].astype(jnp.float32)   # (tr, 128)

    # K=2, N=1 contraction as two broadcast FMAs — stays entirely on the VPU.
    o_ref[...] = (x0 * w0 + x1 * w1 + bias).astype(o_ref.dtype)


def _pick_tile_rows(n_rows, tile_rows):
    """Row tile: multiple of 8, as large as the budget, >=2 grid steps if possible."""
    if n_rows <= 8:
        return max(n_rows, 1)
    half = pl.cdiv(n_rows, 2)                 # keep >=2 steps for v7x megacore
    half_rounded = ((half + 7) // 8) * 8
    return min(tile_rows, half_rounded)


def sum_model_forward_slab(x_slab, params, *, tile_rows=DEFAULT_TILE_ROWS):
    """Core kernel. x_slab: (2, R, 128) f32, params: (3,) f32 = [w0, w1, bias].

    Returns y_slab: (R, 128) with y[r, c] = w0*x[0,r,c] + w1*x[1,r,c] + bias.
    """
    _, n_rows, lanes = x_slab.shape
    assert lanes == LANES

    tr = _pick_tile_rows(n_rows, tile_rows)
    grid = (pl.cdiv(n_rows, tr),)             # ragged last tile is masked

    return pl.pallas_call(
        _linear_kernel,
        out_shape=jax.ShapeDtypeStruct((n_rows, LANES), x_slab.dtype),
        grid_spec=pltpu.PrefetchScalarGridSpec(
            num_scalar_prefetch=0,
            grid=grid,
            in_specs=[
                # 3 scalars -> SMEM (f32[3] pads to 16 B); no per-step VMEM DMA.
                pl.BlockSpec(memory_space=pltpu.MemorySpace.SMEM),
                # x tile: (2, tr, 128), fully (8,128)-dense.
                pl.BlockSpec((2, tr, LANES), lambda i: (0, i, 0)),
            ],
            out_specs=pl.BlockSpec((tr, LANES), lambda i: (i, 0)),
        ),
        compiler_params=pltpu.CompilerParams(
            # Row tiles are independent -> shardable across v7x's two TCs.
            dimension_semantics=("parallel",),
            # ~24 MiB double-buffered at tr=8192; explicit headroom, still
            # under v7x's 64 MiB physical VMEM per TensorCore.
            vmem_limit_bytes=48 * 1024 * 1024,
            # Let XLA fold the wrapper transpose/reshape/pad of x into the
            # pallas_call input DMA instead of a separate HBM pass.
            allow_input_fusion=[False, True],
        ),
    )(params, x_slab)


@functools.partial(jax.jit, static_argnames=("tile_rows",))
def sum_model_forward(x, w, b, *, tile_rows=DEFAULT_TILE_ROWS):
    """x: (B, 2) f32, w: (2, 1) f32, b: (1,) f32  ->  (B, 1) f32."""
    B, IN = x.shape
    OUT = w.shape[1]
    assert IN == 2 and OUT == 1

    # Feature-major relayout.  Only pad when B is not lane-aligned, and then
    # only to the next multiple of 128 (not to a full tile).  allow_input_fusion
    # above lets XLA fuse this relayout into the kernel's input DMA; callers
    # that can produce the (2, R, 128) slab directly should use
    # sum_model_forward_slab and skip this step.
    Bp = pl.cdiv(B, LANES) * LANES
    x_t = x.T                                      # (2, B)
    if Bp != B:
        x_t = jnp.pad(x_t, ((0, 0), (0, Bp - B)))
    x_slab = x_t.reshape(2, Bp // LANES, LANES)

    params = jnp.concatenate([w.reshape(-1), b.reshape(-1)]).astype(jnp.float32)

    y_slab = sum_model_forward_slab(x_slab, params, tile_rows=tile_rows)

    # Back to PyTorch output layout (B, 1); drop the lane padding.
    return y_slab.reshape(Bp)[:B].reshape(B, OUT).astype(x.dtype)


if __name__ == "__main__":
    key = jax.random.PRNGKey(0)
    kx, kw, kb = jax.random.split(key, 3)

    IN, OUT = 2, 1
    bound = 1.0 / (IN ** 0.5)   # nn.Linear-style uniform(-1/sqrt(in), 1/sqrt(in))
    w = jax.random.uniform(kw, (IN, OUT), minval=-bound, maxval=bound,
                           dtype=jnp.float32)
    b = jax.random.uniform(kb, (OUT,), minval=-bound, maxval=bound,
                           dtype=jnp.float32)

    # Lane-aligned batch (multi-step parallel grid), ragged batch (pad + masked
    # last tile), and the tiny original size.
    for B in (2048, 200, 8):
        x = jax.random.normal(jax.random.fold_in(kx, B), (B, IN),
                              dtype=jnp.float32)
        y = jax.block_until_ready(sum_model_forward(x, w, b))
        y_ref = x @ w + b[None, :]
        assert y.shape == (B, OUT)
        assert jnp.allclose(y, y_ref, atol=1e-5, rtol=1e-5), f"mismatch at B={B}"

    print("KERNEL_OK")
</pallas_src>

<mosaic_0001>
module attributes {stable_mosaic.version = 11 : i64} {
  func.func @_linear_kernel(%arg0: i32, %arg1: memref<3xf32, #tpu.memory_space<smem>>, %arg2: memref<2x8x128xf32, #tpu.memory_space<vmem>>, %arg3: memref<8x128xf32, #tpu.memory_space<vmem>>) attributes {dimension_semantics = [#tpu.dimension_semantics<parallel>], iteration_bounds = array<i64: 2>, scalar_prefetch = 0 : i64, scratch_operands = 0 : i64, tpu.core_type = #tpu.core_type<tc>, window_params = [{transform_indices = @transform_0, window_bounds = array<i64: 3>}, {transform_indices = @transform_1, window_bounds = array<i64: 2, 8, 128>}, {transform_indices = @transform_2, window_bounds = array<i64: 8, 128>}]} {
    %c0 = arith.constant 0 : index
    %0 = memref.load %arg1[%c0] : memref<3xf32, #tpu.memory_space<smem>>
    %c1 = arith.constant 1 : index
    %1 = memref.load %arg1[%c1] : memref<3xf32, #tpu.memory_space<smem>>
    %c2 = arith.constant 2 : index
    %2 = memref.load %arg1[%c2] : memref<3xf32, #tpu.memory_space<smem>>
    %c0_0 = arith.constant 0 : index
    %c0_1 = arith.constant 0 : index
    %c0_2 = arith.constant 0 : index
    %3 = vector.load %arg2[%c0_0, %c0_1, %c0_2] : memref<2x8x128xf32, #tpu.memory_space<vmem>>, vector<1x8x128xf32>
    %4 = vector.shape_cast %3 : vector<1x8x128xf32> to vector<8x128xf32>
    %c1_3 = arith.constant 1 : index
    %c0_4 = arith.constant 0 : index
    %c0_5 = arith.constant 0 : index
    %5 = vector.load %arg2[%c1_3, %c0_4, %c0_5] : memref<2x8x128xf32, #tpu.memory_space<vmem>>, vector<1x8x128xf32>
    %6 = vector.shape_cast %5 : vector<1x8x128xf32> to vector<8x128xf32>
    %7 = vector.broadcast %0 : f32 to vector<8x128xf32>
    %8 = arith.mulf %4, %7 : vector<8x128xf32>
    %9 = vector.broadcast %1 : f32 to vector<8x128xf32>
    %10 = arith.mulf %6, %9 : vector<8x128xf32>
    %11 = arith.addf %8, %10 : vector<8x128xf32>
    %12 = vector.broadcast %2 : f32 to vector<8x128xf32>
    %13 = arith.addf %11, %12 : vector<8x128xf32>
    %c0_6 = arith.constant 0 : index
    %c0_7 = arith.constant 0 : index
    %14 = vector.load %arg3[%c0_6, %c0_7] : memref<8x128xf32, #tpu.memory_space<vmem>>, vector<8x128xf32>
    tpu.vector_store %arg3[%c0_6, %c0_7], %13 {strides = array<i32>} : memref<8x128xf32, #tpu.memory_space<vmem>>, vector<8x128xf32>,
    return
  }
  func.func @transform_0(%arg0: i32) -> i32 {
    %c0_i32 = arith.constant 0 : i32
    %c0_i32_0 = arith.constant 0 : i32
    return %c0_i32 : i32
  }
  func.func @transform_1(%arg0: i32) -> (i32, i32, i32) {
    %c0_i32 = arith.constant 0 : i32
    %c0_i32_0 = arith.constant 0 : i32
    %c0_i32_1 = arith.constant 0 : i32
    return %c0_i32, %arg0, %c0_i32_0 : i32, i32, i32
  }
  func.func @transform_2(%arg0: i32) -> (i32, i32) {
    %c0_i32 = arith.constant 0 : i32
    %c0_i32_0 = arith.constant 0 : i32
    return %arg0, %c0_i32 : i32, i32
  }
}

</mosaic_0001>

<bundles_post_ra>
// kernel: sum_model_forward.2
= control target key start
LH: loop header
LB: loop body
LE: loop exit
PB: predicated region body
PF: predicated region fallthrough
CT: control target
= control target key end

     0   :  { %7 = vsyncpa [#allocation4], 0  ;;  %s543_s0 = inlined_call_operand.vmem [shape: f32[3], index: 0, kind: input, shape index: {}]   ;;  %s544_s1 = inlined_call_operand.vmem [shape: f32[1,2,16,128], index: 1, kind: input, shape index: {}]   ;;  %s545_s2 = inlined_call_operand.hbm [shape: f32[16,128], index: 2, kind: output, shape index: {}]  }
   0x1   :  { %8 = vsyncpa [#allocation3], 0 }
   0x2   :  { %10 = vsyncpa [#allocation3 + $0x1], 0  ;;  %s425_s9 = smov 0   ;;  %s427_s10 = smov 0  }
   0x3   :  { %s429_s11 = smov 0   ;;  %s431_s12 = smov 0  }
   0x4 LB: > { %s446_s13 = sadd.s32 4294967295, %s406_s12   ;;  %s260_s14 = sadd.s32 4294967294, %s406_s12   ;;  %s406_s12 = sphi %s431_s12, %s552_s12   ;;  %s402_s11 = sphi %s429_s11, %s551_s11   ;;  %s398_s10 = sphi %s427_s10, %s550_s10   ;;  %s394_s9 = sphi %s425_s9, %s549_s9  }
   0x5   : > { %s450_s15 = sadd.s32 1, %s406_s12   ;;  %s70_s16 = sadd.s32 1, %s402_s11 }
   0x6   : > { %s67_s17 = ssub.s32 %s406_s12, %s450_s15  ;;  %p80_p0 = scmp.ne.s32.totalorder %s402_s11, %s398_s10 }
   0x7   : > { %p68_p1 = scmp.eq.s32.totalorder %s67_s17, 0  ;;  %p81_p2 = scmp.eq.s32.totalorder %s446_s13, 1 }
   0x8   : > { %p86_p3 = scmp.ne.s32.totalorder %s398_s10, %s394_s9  ;;  %p87_p4 = scmp.eq.s32.totalorder %s260_s14, 1 }
   0x9   : > { %s461_s18 = scalar_select %p68_p1, %s402_s11, %s70_s16  }
   0xa   : > { %p463_p5 = por %p81_p2, %p80_p0  ;;  %p467_p6 = por %p87_p4, %p86_p3 }
   0xb   : > { %p261_p7 = scmp.ge.s32.totalorder %s406_s12, 1  ;;  %p94_p8 = scmp.lt.s32.totalorder %s406_s12, 3 }
   0xc   : > { %p289_p9 = scmp.eq.s32.totalorder %s446_s13, 0  ;;  %s107_s24 = sshll.u32 %s543_s0, 4  ;;  %s108_s24 = int_to_ptr.vmem [resolvable:$true] %s107_s24 }
   0xd   : > { %p474_p10 = pnand %p261_p7, %p94_p8  ;;  %s325_s25 = scalar_lea.vmem %s108_s24, 16 }
   0xe   : > { %p326_p13 = scmp.ne.s32.totalorder %s108_s24, %s325_s25  ;;  %p333_p3 = scmp.lt.s32.totalorder %s108_s24, %s108_s24 }
   0xf   : > { %p281_p11 = pneg %p474_p10  ;;  %p334_p4 = scmp.lt.s32.totalorder %s325_s25, %s325_s25 }
  0x11   : > { %p282_p12 = pnand %p289_p9, %p281_p11  ;;  %p335_p7 = por %p334_p4, %p333_p3 }
  0x13   : > { %p327_p0 = pneg %p282_p12 }
  0x15   : > { %p328_p1 = pnand %p327_p0, %p326_p13 }
  0x17   : > { %p329_p2 = pneg %p328_p1 }
  0x19   : > { %p336_p8 = pnand %p335_p7, %p329_p2 }
  0x1b   : > { %339 = shalt.err (!%p336_p8)
}
  0x1c   : > { %s408_s26 = smov [#allocation2]   ;;  %127 = sbr.rel (%p474_p10) target bundleno = 68 (0x44), region = 28 }
  0x1d   : > { %284 = dma.vmem_to_smem (!%p282_p12), %s108_s24, 16, %s408_s26, [#allocation4]  }
  0x23   : > { %385 = dma.done.wait (%p289_p9), [#allocation4], 16  }
  0x24   : > { %387 = vsyncadd (%p289_p9), [#allocation4], 4294967280 }
  0x25   : > { %133 = sfence }
  0x26   : > { %p149_p11 = scmp.lt.s32.totalorder %s446_s13, 1  ;;  %s146_s27 = sand.u32 1, %s398_s10  }
  0x27   : > { %s161_s28 = sld [smem:[#allocation2]]  ;;  %s269_s29 = sld [smem:[#allocation2 + $0x1]] }
  0x28   : > { %s150_s30 = scalar_select %p149_p11, %s446_s13, 1 }
  0x29   : > { %s266_s3 = sshll.u32 %s146_s27, 3  ;;  %s270_s4 = sld [smem:[#allocation2 + $0x2]] }
  0x2a   : > { %s267_s5 = sshll.u32 %s150_s30, 3  ;;  %s272_s14 = sshll.u32 %s446_s13, 7 }
  0x2b   : > { %s152_s8 = scalar_lea.vmem %s544_s1, %s267_s5  ;;  %s148_s16 = scalar_lea.vmem [#allocation5], %s266_s3 }
  0x2c   : > { %v153_v0 = vld [vmem:[%s152_s8] sm:$0xff]  ;;  %v268_v1 = vld [vmem:[%s152_s8 + $0x10] sm:$0xff]  ;;  %s189_s17 = sshll.u32 %s148_s16, 4  ;;  %s501_s23 = scalar_lea.hbm %s545_s2, %s272_s14  ;;  %s503_s17 = int_to_ptr.vmem [resolvable:$true] %s189_s17 }
  0x2d   : > { %v167_v2 = vstv %s161_s28  ;;  %v169_v4 = vstv %s269_s29  ;;  %s176_s24 = scalar_lea.sflag [#allocation3], %s146_s27  ;;  %s340_s25 = scalar_lea.vmem %s503_s17, 128 }
  0x2e   : > { %v168_v3 = vmul.f32 %v167_v2, %v153_v0  ;;  %v170_v5 = vmul.f32 %v268_v1, %v169_v4  ;;  %p341_p9 = scmp.ne.s32.totalorder %s503_s17, %s340_s25  ;;  %s409_s13 = smov [#allocation5]  }
  0x2f   : > { %v172_v6 = vstv %s270_s4  ;;  %s344_s26 = sshll.u32 %s409_s13, 4  ;;  %s345_s26 = int_to_ptr.vmem [resolvable:$false] %s344_s26 }
  0x30   : > { %v171_v7 = vadd.f32 %v170_v5, %v168_v3  ;;  %p342_p10 = pnand %p341_p9, %p463_p5  ;;  %s346_s28 = scalar_lea.vmem %s345_s26, 256 }
  0x31   : > { %p347_p13 = scmp.lt.s32.totalorder %s503_s17, %s345_s26  ;;  %p348_p0 = scmp.lt.s32.totalorder %s346_s28, %s340_s25 }
  0x32   : > { %v173_v8 = vadd.f32 %v172_v6, %v171_v7  ;;  %p343_p12 = pneg %p342_p10 }
  0x33   : > { %p349_p1 = por %p348_p0, %p347_p13 }
  0x34   : > { %174 = vst [vmem:[%s148_s16] sm:$0xff] %v173_v8 }
  0x35   : > { %p350_p2 = pnand %p349_p1, %p343_p12 }
  0x37   : > { %353 = shalt.err (!%p350_p2)
}
  0x38   : > { %s354_s27 = scalar_lea.hbm %s501_s23, 128  ;;  %s358_s3 = scalar_lea.hbm %s545_s2, 256 }
  0x39   : > { %p355_p3 = scmp.ne.s32.totalorder %s501_s23, %s354_s27  ;;  %p359_p8 = scmp.lt.u32.totalorder %s501_s23, %s545_s2 }
  0x3a   : > { %p360_p11 = scmp.lt.u32.totalorder %s358_s3, %s354_s27  ;;  %p362_p10 = scmp.lt.u32.totalorder %s354_s27, %s501_s23 }
  0x3b   : > { %p356_p4 = pnand %p355_p3, %p463_p5 }
  0x3c   : > { %p361_p9 = por %p360_p11, %p359_p8 }
  0x3d   : > { %p357_p7 = pneg %p356_p4 }
  0x3e   : > { %p363_p12 = por %p362_p10, %p361_p9 }
  0x40   : > { %p364_p13 = pnand %p363_p12, %p357_p7 }
  0x42   : > { %367 = shalt.err (!%p364_p13)
}
  0x43   : > { %279 = dma.vmem_to_hbm [thread:$0]  (%p463_p5), %s503_s17, 128, %s501_s23, %s176_s24  }
  0x44 PF: > { %p291_p0 = scmp.ge.s32.totalorder %s406_s12, 2  ;;  %s201_s6 = sand.u32 1, %s394_s9  }
  0x45   : > { %s202_s7 = scalar_lea.sflag [#allocation3], %s201_s6 }
  0x46   : > { %p286_p1 = pnand %p291_p0, %p467_p6 }
  0x48   : > { %389 = dma.done.wait (!%p286_p1), %s202_s7, 128  }
  0x49   : > { %391 = vsyncadd (!%p286_p1), %s202_s7, 4294967168  ;;  %p13_p2 = scmp.ge.s32.totalorder %s450_s15, 4   ;;  %s549_s9 = smov %s398_s10 }
  0x4a   : > { %s550_s10 = smov %s402_s11  ;;  %s551_s11 = smov %s461_s18 }
  0x4b   : > { %s552_s12 = smov %s450_s15  ;;  %15 = sbr.rel (!%p13_p2) target bundleno = 4 (0x4), region = 71 }
  0x52   :  { %207 = vsyncpa [#allocation3], 1 }
  0x53   :  { %209 = vsyncpa [#allocation3 + $0x1], 1 }
  0x54   :  { %210 = vsyncpa [#allocation4], 1 }
  0x55   :  { %212 = vsyncpa [#allocation4 + $0x1], 1 }

</bundles_post_ra>
